<compile_context>
chip_gen: v7x
topology: tpu7x:2x2x1
jax: 0.10.0
libtpu: 0.0.40
codegen_flags: <defaults>
</compile_context>

<pallas_src>
import math

import jax
import jax.numpy as jnp
from jax.experimental import pallas as pl
from jax.experimental.pallas import tpu as pltpu

# ----------------------------- config (mirrors the PyTorch `configs`) --------
SEQ_LEN = 24
PRED_LEN = 16
PATCH_LEN = 8            # P  (depth_conv kernel_size=8 requires patch_len >= 8)
STRIDE = 8
N_HEADS = 2
PADDING_PATCH = "end"

P = PATCH_LEN
L = int((SEQ_LEN - PATCH_LEN) / STRIDE + 1) + (1 if PADDING_PATCH == "end" else 0)  # 4
DM = PATCH_LEN * PATCH_LEN        # d_model = patch_len ** 2 = 64
H = N_HEADS
HD = L // H                       # heads split the patch_num axis -> head_dim = 2
SCALE = HD ** (-0.5)
K = 8                             # depth_conv kernel size (hard coded in the module)
LN_EPS = 1e-5
BN_EPS = 1e-5
BN_SCALE = 1.0 / math.sqrt(1.0 + BN_EPS)

LP = L * P                        # flattened (patch_num, patch_len) width = 32
AW = HD * H * P * P               # attention broadcast width (c, h, i, j)  = 256
SW = H * P * P                    # attention score width     (h, i, j)     = 128
MLP_H = 2 * PRED_LEN              # MLP hidden width = 32

assert L % H == 0, "patch_num must be divisible by n_heads"
assert K == P == 8, "depthwise-conv window extraction assumes kernel == stride == patch_len"
assert DM == P * P

ROW_BLOCK = 1024                  # (batch*feature) rows per grid step; sweep 512-2048

HIGHEST = jax.lax.Precision.HIGHEST


def _mm(a, b):
    # Single-pass bf16 x bf16 MXU matmul with an f32 accumulator.
    return jnp.dot(a, b, preferred_element_type=jnp.float32)


def _bf16(x):
    return x.astype(jnp.bfloat16)


# ----------------------------- Pallas kernel ---------------------------------
def _backbone_kernel(x_ref, w_zout, b_zout, w_a, b_a, m_ln, w_qkv, b_qkv,
                     m_sumj, w_pj0, w_pj1, b_h1, w_m2, b_m2, out_ref):
    x = x_ref[...]                                            # bf16 (R, 32): (l, p) patches

    # embed folded with [lin_res | depth_res | depthwise-conv]: one 32 -> 80 matmul.
    zout = _mm(x, w_zout[...]) + b_zout[...]                  # f32 (R, 80)
    zr = zout[:, :PRED_LEN]                                   # lin_res branch (kept live)
    res = zout[:, PRED_LEN:PRED_LEN + LP]                     # depth_res
    zc = zout[:, PRED_LEN + LP:]                              # depthwise conv (k=8, stride=P)

    # Local_Relational_Block tail: GELU(tanh) -> BatchNorm(eval, fresh stats) -> +res
    zd = jax.nn.gelu(zc, approximate=True) * BN_SCALE + res   # f32 (R, 32)

    # point_conv fused with the LayerNorm centering and with MLP fc1 applied to the
    # residual branch:  dz = [ zp - mean_l(zp) | zp @ W1 ]   (zp itself never needed).
    dz = _mm(_bf16(zd), w_a[...]) + b_a[...]                  # f32 (R, 64)
    d = dz[:, :LP]
    zp_m1 = dz[:, LP:]

    # LayerNorm variance over the patch axis (grouped mean as a matmul); gamma/beta are
    # folded into w_qkv / b_qkv downstream.
    var = _mm(_bf16(d * d), m_ln[...])                        # f32 (R, 32)
    xn = d * jax.lax.rsqrt(var + LN_EPS)

    # q/k/v emitted directly in lane-broadcast (c, h, i, j) layouts (attn scale and the
    # LayerNorm affine are folded into the weights).
    qkv = _mm(_bf16(xn), w_qkv[...]) + b_qkv[...]             # f32 (R, 768)
    qk = qkv[:, :AW] * qkv[:, AW:2 * AW]                      # q*k, layout (c, h, i, j)
    s = qk[:, :SW] + qk[:, SW:]                               # sum over c -> scores (h, i, j)
    # Row-global max shift: exact softmax math while no group underflows (scores are
    # O(1) here); den clamped so an underflowed group yields zeros instead of NaN.
    s = s - jnp.max(s, axis=-1, keepdims=True)
    e = jnp.exp(s)
    den = _mm(_bf16(e), m_sumj[...])                          # per-(h,i) sums, bcast over j
    att = e * pl.reciprocal(jnp.maximum(den, 1e-30), approx=True)   # softmax over j (EUP)

    # attn*v in two 128-lane halves (no concatenate copy); the head-merge + proj is
    # pre-composed with fc1, so this lands directly in the MLP hidden layout.
    v = qkv[:, 2 * AW:]
    h1g = _mm(_bf16(att * v[:, :SW]), w_pj0[...]) + _mm(_bf16(att * v[:, SW:]), w_pj1[...])

    # Mlp head (z2 = zp + proj(attn@v) is consumed only by fc1, so it is never formed).
    h1 = jax.nn.gelu(zp_m1 + h1g + b_h1[...], approximate=True)
    zm = _mm(_bf16(h1), w_m2[...]) + b_m2[...]                # f32 (R, 16)

    out_ref[...] = zr + zm                                    # single store per grid step


# ----------------------------- glue: patching + weight packing ---------------
def _round_up(a, m):
    return (a + m - 1) // m * m


def _choose_grid(BD, row_block):
    """Rows-per-block and block count: big blocks to amortize per-step overhead, but
    >= 2 (preferably even) blocks when possible so a 2-TC chip (v7x) can shard the
    1-D "parallel" grid axis."""
    nb = max((BD + row_block - 1) // row_block, 2 if BD > 16 else 1)
    if nb > 1 and nb % 2:
        nb += 1
    R = _round_up(max(1, (BD + nb - 1) // nb), 16)
    nb = (BD + R - 1) // R
    return R, nb


def make_patches_flat(x):
    """x: (B, S, D) -> (B*D, L*P) f32  (ReplicationPad1d((0, stride)) + unfold)."""
    B, S, D = x.shape
    xp = jnp.transpose(x, (0, 2, 1))                              # (B, D, S)
    pad = jnp.repeat(xp[:, :, -1:], STRIDE, axis=-1)
    xp = jnp.concatenate([xp, pad], axis=-1)                      # (B, D, S + stride)
    idx = jnp.arange(L)[:, None] * STRIDE + jnp.arange(P)[None, :]
    patches = xp[:, :, idx]                                       # (B, D, L, P)
    return patches.reshape(B * D, LP).astype(jnp.float32)


def pack_params(p):
    """Re-express every per-row linear op of the module as a dense (F_in, F_out) matrix
    acting on flattened per-row feature layouts, fold adjacent linear ops together, and
    cast the matmul operands to bf16.  Built once in glue (hoisted out of the kernel)."""
    f32 = jnp.float32
    I_L = jnp.eye(L, dtype=f32)
    I_P = jnp.eye(P, dtype=f32)
    I_H = jnp.eye(H, dtype=f32)
    I_LP = jnp.eye(LP, dtype=f32)
    ones_p = jnp.ones((P,), f32)

    def dot(a, b):
        return jnp.dot(a, b, precision=HIGHEST)

    # --- embed folded with [lin_res | depth_res | depth_conv] --------------------
    w_embed = jnp.einsum("ab,pd->apbd", I_L, p["we"], precision=HIGHEST).reshape(LP, L * DM)
    b_embed = jnp.tile(p["be"].reshape(1, DM), (1, L))
    w_zr = p["wres"]                                               # (L*DM, PRED), l-major
    b_zr = p["bres"].reshape(1, PRED_LEN)
    w_res = jnp.einsum("ab,dq->adbq", I_L, p["wdr"], precision=HIGHEST).reshape(L * DM, LP)
    b_res = jnp.tile(p["bdr"].reshape(1, P), (1, L))
    w_dc = jnp.einsum("ab,qr,ak->aqkbr", I_L, I_P, p["wdc"],
                      precision=HIGHEST).reshape(L * DM, LP)       # kernel==stride==P windows
    b_dc = jnp.tile(p["bdc"].reshape(L, 1), (1, P)).reshape(1, LP)
    w_z3 = jnp.concatenate([w_zr, w_res, w_dc], axis=1)            # (256, 80)
    b_z3 = jnp.concatenate([b_zr, b_res, b_dc], axis=1)
    # z (embed output) is only consumed linearly -> fold embed in (one matmul saved).
    w_zout = dot(w_embed, w_z3)                                    # (32, 80)
    b_zout = dot(b_embed, w_z3) + b_z3                             # (1, 80)

    # --- point_conv fused with LN centering and with MLP fc1 ---------------------
    w_pc = jnp.einsum("ba,qr->aqbr", p["wpc"], I_P, precision=HIGHEST).reshape(LP, LP)
    b_pc = jnp.tile(p["bpc"].reshape(L, 1), (1, P)).reshape(1, LP)
    m_ln = jnp.einsum("ab,qr->aqbr", jnp.full((L, L), 1.0 / L, f32), I_P,
                      precision=HIGHEST).reshape(LP, LP)           # group mean over patches l
    w1 = p["w1"]                                                   # (32, 32) MLP fc1
    w_a = jnp.concatenate([dot(w_pc, I_LP - m_ln), dot(w_pc, w1)], axis=1)   # (32, 64)
    b_a = jnp.concatenate([dot(b_pc, I_LP - m_ln), dot(b_pc, w1)], axis=1)   # (1, 64)

    # --- q / k / v in broadcast (c, h, i, j) layouts; attn scale + LN affine folded --
    g_flat = jnp.tile(p["gamma"].reshape(L, 1), (1, P)).reshape(LP)
    be_flat = jnp.tile(p["beta"].reshape(L, 1), (1, P)).reshape(1, LP)
    wq = p["wq"].reshape(L, H, HD)
    wk = p["wkv"][:, :L].reshape(L, H, HD)
    wv = p["wkv"][:, L:].reshape(L, H, HD)
    bq = p["bq"].reshape(H, HD)
    bk = p["bkv"].reshape(2 * L)[:L].reshape(H, HD)
    bv = p["bkv"].reshape(2 * L)[L:].reshape(H, HD)
    w_q = jnp.einsum("mhc,ri,j->mrchij", wq, I_P, ones_p, precision=HIGHEST).reshape(LP, AW) * SCALE
    w_k = jnp.einsum("mhc,rj,i->mrchij", wk, I_P, ones_p, precision=HIGHEST).reshape(LP, AW)
    w_v = jnp.einsum("mhc,rj,i->mrchij", wv, I_P, ones_p, precision=HIGHEST).reshape(LP, AW)
    b_q = jnp.einsum("hc,i,j->chij", bq, ones_p, ones_p, precision=HIGHEST).reshape(1, AW) * SCALE
    b_k = jnp.einsum("hc,i,j->chij", bk, ones_p, ones_p, precision=HIGHEST).reshape(1, AW)
    b_v = jnp.einsum("hc,i,j->chij", bv, ones_p, ones_p, precision=HIGHEST).reshape(1, AW)
    w_qkv0 = jnp.concatenate([w_q, w_k, w_v], axis=1)              # (32, 768)
    b_qkv0 = jnp.concatenate([b_q, b_k, b_v], axis=1)
    w_qkv = g_flat[:, None] * w_qkv0                               # LayerNorm gamma folded
    b_qkv = dot(be_flat, w_qkv0) + b_qkv0                          # LayerNorm beta folded

    # --- softmax denominator: per-(h, i) sum over j, broadcast back to every j lane --
    m_sumj = jnp.einsum("ab,ij,k,l->aikbjl", I_H, I_P, ones_p, ones_p,
                        precision=HIGHEST).reshape(SW, SW)

    # --- (attn @ v) + head merge + proj + transpose back, pre-composed with MLP fc1 --
    wpj = p["wpj"].reshape(H, HD, L)
    w_pj = jnp.einsum("hcm,ir,j->chijmr", wpj, I_P, ones_p, precision=HIGHEST).reshape(AW, LP)
    b_pj = jnp.tile(p["bpj"].reshape(L, 1), (1, P)).reshape(1, LP)
    w_pjm1 = dot(w_pj, w1)                                         # (256, 32)
    b_h1 = dot(b_pj, w1) + p["b1"].reshape(1, MLP_H)               # (1, 32)

    bf16 = jnp.bfloat16
    return [w_zout.astype(bf16), b_zout,
            w_a.astype(bf16), b_a,
            m_ln.astype(bf16),
            w_qkv.astype(bf16), b_qkv,
            m_sumj.astype(bf16),
            w_pjm1[:SW].astype(bf16), w_pjm1[SW:].astype(bf16), b_h1,
            p["w2"].astype(bf16), p["b2"].reshape(1, PRED_LEN)]


# ----------------------------- forward ---------------------------------------
def backbone_forward(x, params, row_block=ROW_BLOCK):
    B, S, D = x.shape
    BD = B * D
    xf = make_patches_flat(x)                                     # (BD, 32) f32

    R, n_blocks = _choose_grid(BD, row_block)
    BDp = n_blocks * R
    if BDp != BD:
        xf = jnp.pad(xf, ((0, BDp - BD), (0, 0)))
    xf = xf.astype(jnp.bfloat16)                                  # bf16 MXU operand

    weights = pack_params(params)
    in_specs = [pl.BlockSpec((R, LP), lambda i: (i, 0))]
    in_specs += [pl.BlockSpec(w.shape, lambda i: (0, 0)) for w in weights]

    out = pl.pallas_call(
        _backbone_kernel,
        out_shape=jax.ShapeDtypeStruct((BDp, PRED_LEN), jnp.float32),
        grid_spec=pltpu.PrefetchScalarGridSpec(
            num_scalar_prefetch=0,
            grid=(n_blocks,),
            in_specs=in_specs,
            out_specs=pl.BlockSpec((R, PRED_LEN), lambda i: (i, 0)),
        ),
        compiler_params=pltpu.CompilerParams(
            dimension_semantics=("parallel",),
            vmem_limit_bytes=32 * 1024 * 1024,   # fits v7x's 64 MiB VMEM with headroom
        ),
    )(xf, *weights)

    out = out[:BD].reshape(B, D, PRED_LEN)
    return jnp.transpose(out, (0, 2, 1))                          # (B, pred_len, D)


# ----------------------------- pure-JAX reference (independent math) ---------
def _row_reference(xr, p):
    """Straightforward per-row transcription of the PyTorch module (exact-erf GELU)."""
    z = xr @ p["we"] + p["be"].reshape(DM)                        # (L, DM)
    zr = z.reshape(L * DM) @ p["wres"] + p["bres"].reshape(PRED_LEN)
    res = z @ p["wdr"] + p["bdr"].reshape(P)                      # (L, P)
    win = z.reshape(L, P, P)                                      # kernel == stride == P
    zc = jnp.einsum("lqk,lk->lq", win, p["wdc"]) + p["bdc"].reshape(L, 1)
    zd = jax.nn.gelu(zc, approximate=False) * BN_SCALE + res
    zp = p["wpc"] @ zd + p["bpc"].reshape(L, 1)                   # (L, P)

    y = zp.T                                                      # (P, L)
    mu = jnp.mean(y, axis=-1, keepdims=True)
    var = jnp.mean((y - mu) ** 2, axis=-1, keepdims=True)
    xn = (y - mu) * jax.lax.rsqrt(var + LN_EPS) * p["gamma"].reshape(L) + p["beta"].reshape(L)

    q = xn @ p["wq"] + p["bq"].reshape(L)
    kv = xn @ p["wkv"] + p["bkv"].reshape(2 * L)
    k_, v_ = kv[:, :L], kv[:, L:]
    qh = q.reshape(P, H, HD).transpose(1, 0, 2)
    kh = k_.reshape(P, H, HD).transpose(1, 0, 2)
    vh = v_.reshape(P, H, HD).transpose(1, 0, 2)
    att = jax.nn.softmax(jnp.einsum("hic,hjc->hij", qh, kh) * SCALE, axis=-1)
    o = jnp.einsum("hij,hjc->hic", att, vh).transpose(1, 0, 2).reshape(P, L)
    op = o @ p["wpj"] + p["bpj"].reshape(L)
    z2 = zp + op.T                                                # (L, P)

    h1 = jax.nn.gelu(z2.reshape(LP) @ p["w1"] + p["b1"].reshape(MLP_H),
                     approximate=False)
    zm = h1 @ p["w2"] + p["b2"].reshape(PRED_LEN)
    return zr + zm


def reference_forward(x, params):
    B, S, D = x.shape
    patches = make_patches_flat(x).reshape(B * D, L, P)
    rows = jax.vmap(lambda r: _row_reference(r, params))(patches)
    return jnp.transpose(rows.reshape(B, D, PRED_LEN), (0, 2, 1))


# ----------------------------- parameter init --------------------------------
def init_params(key):
    ks = jax.random.split(key, 22)

    def rnd(k, shape, scale):
        return jax.random.normal(k, shape, jnp.float32) * scale

    s = 0.3
    return {
        "we": rnd(ks[0], (P, DM), s),                   "be": rnd(ks[1], (1, DM), s),
        "wres": rnd(ks[2], (L * DM, PRED_LEN), s),      "bres": rnd(ks[3], (1, PRED_LEN), s),
        "wdr": rnd(ks[4], (DM, P), s),                  "bdr": rnd(ks[5], (1, P), s),
        "wdc": rnd(ks[6], (L, K), math.sqrt(2.0 / K)),  "bdc": rnd(ks[7], (L, 1), s),
        "wpc": rnd(ks[8], (L, L), math.sqrt(2.0 / L)),  "bpc": rnd(ks[9], (L, 1), s),
        "gamma": 1.0 + rnd(ks[10], (1, L), 0.2),        "beta": rnd(ks[11], (1, L), 0.2),
        "wq": rnd(ks[12], (L, L), s),                   "bq": rnd(ks[13], (1, L), s),
        "wkv": rnd(ks[14], (L, 2 * L), s),              "bkv": rnd(ks[15], (1, 2 * L), s),
        "wpj": rnd(ks[16], (L, L), s),                  "bpj": rnd(ks[17], (1, L), s),
        "w1": rnd(ks[18], (LP, MLP_H), s),              "b1": rnd(ks[19], (1, MLP_H), s),
        "w2": rnd(ks[20], (MLP_H, PRED_LEN), s),        "b2": rnd(ks[21], (1, PRED_LEN), s),
    }


# ----------------------------- main -------------------------------------------
if __name__ == "__main__":
    key = jax.random.PRNGKey(0)
    kx, kp, kx2 = jax.random.split(key, 3)
    params = init_params(kp)

    fwd = jax.jit(backbone_forward)

    # Tolerance: the kernel uses single-pass bf16 MXU operands + tanh GELU against an
    # exact-erf f32 HIGHEST reference; 2e-2 of the reference max is the standard
    # envelope for that (observed error is typically an order of magnitude smaller).
    TOL = 2e-2

    # small example (B, seq_len, D) as the module expects
    B, D = 2, 3
    x = jax.random.normal(kx, (B, SEQ_LEN, D), jnp.float32)
    out = jax.block_until_ready(fwd(x, params))
    assert out.shape == (B, PRED_LEN, D), out.shape
    with jax.default_matmul_precision("highest"):
        ref = reference_forward(x, params)
    err = float(jnp.max(jnp.abs(out - ref)))
    ref_max = float(jnp.max(jnp.abs(ref)))
    assert err <= TOL * max(1.0, ref_max), f"kernel/reference mismatch (small): {err}"

    # larger row count: exercises the multi-block grid (>= 2 blocks) + row padding
    B2, D2 = 2, 300
    x2 = jax.random.normal(kx2, (B2, SEQ_LEN, D2), jnp.float32)
    out2 = jax.block_until_ready(fwd(x2, params))
    assert out2.shape == (B2, PRED_LEN, D2), out2.shape
    with jax.default_matmul_precision("highest"):
        ref2 = reference_forward(x2, params)
    err2 = float(jnp.max(jnp.abs(out2 - ref2)))
    ref2_max = float(jnp.max(jnp.abs(ref2)))
    assert err2 <= TOL * max(1.0, ref2_max), f"kernel/reference mismatch (large): {err2}"

    print("KERNEL_OK")
</pallas_src>

<mosaic_0001>
module attributes {stable_mosaic.version = 11 : i64} {
  func.func @_backbone_kernel(%arg0: i32, %arg1: memref<16x32xbf16, #tpu.memory_space<vmem>>, %arg2: memref<32x80xbf16, #tpu.memory_space<vmem>>, %arg3: memref<1x80xf32, #tpu.memory_space<vmem>>, %arg4: memref<32x64xbf16, #tpu.memory_space<vmem>>, %arg5: memref<1x64xf32, #tpu.memory_space<vmem>>, %arg6: memref<32x32xbf16, #tpu.memory_space<vmem>>, %arg7: memref<32x768xbf16, #tpu.memory_space<vmem>>, %arg8: memref<1x768xf32, #tpu.memory_space<vmem>>, %arg9: memref<128x128xbf16, #tpu.memory_space<vmem>>, %arg10: memref<128x32xbf16, #tpu.memory_space<vmem>>, %arg11: memref<128x32xbf16, #tpu.memory_space<vmem>>, %arg12: memref<1x32xf32, #tpu.memory_space<vmem>>, %arg13: memref<32x16xbf16, #tpu.memory_space<vmem>>, %arg14: memref<1x16xf32, #tpu.memory_space<vmem>>, %arg15: memref<16x16xf32, #tpu.memory_space<vmem>>) attributes {dimension_semantics = [#tpu.dimension_semantics<parallel>], iteration_bounds = array<i64: 1>, scalar_prefetch = 0 : i64, scratch_operands = 0 : i64, tpu.core_type = #tpu.core_type<tc>, window_params = [{transform_indices = @transform_0, window_bounds = array<i64: 16, 32>}, {pipeline_mode = #tpu.pipeline_mode<synchronous>, transform_indices = @transform_1, window_bounds = array<i64: 32, 80>}, {pipeline_mode = #tpu.pipeline_mode<synchronous>, transform_indices = @transform_2, window_bounds = array<i64: 1, 80>}, {pipeline_mode = #tpu.pipeline_mode<synchronous>, transform_indices = @transform_3, window_bounds = array<i64: 32, 64>}, {pipeline_mode = #tpu.pipeline_mode<synchronous>, transform_indices = @transform_4, window_bounds = array<i64: 1, 64>}, {pipeline_mode = #tpu.pipeline_mode<synchronous>, transform_indices = @transform_5, window_bounds = array<i64: 32, 32>}, {pipeline_mode = #tpu.pipeline_mode<synchronous>, transform_indices = @transform_6, window_bounds = array<i64: 32, 768>}, {pipeline_mode = #tpu.pipeline_mode<synchronous>, transform_indices = @transform_7, window_bounds = array<i64: 1, 768>}, {pipeline_mode = #tpu.pipeline_mode<synchronous>, transform_indices = @transform_8, window_bounds = array<i64: 128, 128>}, {pipeline_mode = #tpu.pipeline_mode<synchronous>, transform_indices = @transform_9, window_bounds = array<i64: 128, 32>}, {pipeline_mode = #tpu.pipeline_mode<synchronous>, transform_indices = @transform_10, window_bounds = array<i64: 128, 32>}, {pipeline_mode = #tpu.pipeline_mode<synchronous>, transform_indices = @transform_11, window_bounds = array<i64: 1, 32>}, {pipeline_mode = #tpu.pipeline_mode<synchronous>, transform_indices = @transform_12, window_bounds = array<i64: 32, 16>}, {pipeline_mode = #tpu.pipeline_mode<synchronous>, transform_indices = @transform_13, window_bounds = array<i64: 1, 16>}, {transform_indices = @transform_14, window_bounds = array<i64: 16, 16>}]} {
    %c0 = arith.constant 0 : index
    %c0_0 = arith.constant 0 : index
    %0 = vector.load %arg1[%c0, %c0_0] : memref<16x32xbf16, #tpu.memory_space<vmem>>, vector<16x32xbf16>
    %c0_1 = arith.constant 0 : index
    %c0_2 = arith.constant 0 : index
    %1 = vector.load %arg2[%c0_1, %c0_2] : memref<32x80xbf16, #tpu.memory_space<vmem>>, vector<32x80xbf16>
    %cst = arith.constant dense<0.000000e+00> : vector<16x80xf32>
    %2 = tpu.matmul %0, %1, %cst {dimension_numbers = #tpu.dot_dimension_numbers<[1], [0], [0], [1], [0, 0, 1, 1], [], []>} : vector<16x32xbf16>, vector<32x80xbf16>, vector<16x80xf32> -> vector<16x80xf32>
    %c0_3 = arith.constant 0 : index
    %c0_4 = arith.constant 0 : index
    %3 = vector.load %arg3[%c0_3, %c0_4] : memref<1x80xf32, #tpu.memory_space<vmem>>, vector<1x80xf32>
    %4 = vector.broadcast %3 : vector<1x80xf32> to vector<16x80xf32>
    %5 = arith.addf %2, %4 : vector<16x80xf32>
    %6 = vector.extract_strided_slice %5 {offsets = [0, 0], sizes = [16, 16], strides = [1, 1]} : vector<16x80xf32> to vector<16x16xf32>
    %7 = vector.extract_strided_slice %5 {offsets = [0, 16], sizes = [16, 32], strides = [1, 1]} : vector<16x80xf32> to vector<16x32xf32>
    %8 = vector.extract_strided_slice %5 {offsets = [0, 48], sizes = [16, 32], strides = [1, 1]} : vector<16x80xf32> to vector<16x32xf32>
    %9 = arith.mulf %8, %8 : vector<16x32xf32>
    %10 = arith.mulf %8, %9 : vector<16x32xf32>
    %cst_5 = arith.constant 4.471500e-02 : f32
    %11 = vector.broadcast %cst_5 : f32 to vector<16x32xf32>
    %12 = arith.mulf %11, %10 : vector<16x32xf32>
    %13 = arith.addf %8, %12 : vector<16x32xf32>
    %cst_6 = arith.constant 0.797884583 : f32
    %14 = vector.broadcast %cst_6 : f32 to vector<16x32xf32>
    %15 = arith.mulf %14, %13 : vector<16x32xf32>
    %16 = math.tanh %15 : vector<16x32xf32>
    %cst_7 = arith.constant 1.000000e+00 : f32
    %17 = vector.broadcast %cst_7 : f32 to vector<16x32xf32>
    %18 = arith.addf %17, %16 : vector<16x32xf32>
    %cst_8 = arith.constant 5.000000e-01 : f32
    %19 = vector.broadcast %cst_8 : f32 to vector<16x32xf32>
    %20 = arith.mulf %19, %18 : vector<16x32xf32>
    %21 = arith.mulf %8, %20 : vector<16x32xf32>
    %cst_9 = arith.constant 0.999994993 : f32
    %22 = vector.broadcast %cst_9 : f32 to vector<16x32xf32>
    %23 = arith.mulf %21, %22 : vector<16x32xf32>
    %24 = arith.addf %23, %7 : vector<16x32xf32>
    %25 = arith.truncf %24 : vector<16x32xf32> to vector<16x32xbf16>
    %c0_10 = arith.constant 0 : index
    %c0_11 = arith.constant 0 : index
    %26 = vector.load %arg4[%c0_10, %c0_11] : memref<32x64xbf16, #tpu.memory_space<vmem>>, vector<32x64xbf16>
    %cst_12 = arith.constant dense<0.000000e+00> : vector<16x64xf32>
    %27 = tpu.matmul %25, %26, %cst_12 {dimension_numbers = #tpu.dot_dimension_numbers<[1], [0], [0], [1], [0, 0, 1, 1], [], []>} : vector<16x32xbf16>, vector<32x64xbf16>, vector<16x64xf32> -> vector<16x64xf32>
    %c0_13 = arith.constant 0 : index
    %c0_14 = arith.constant 0 : index
    %28 = vector.load %arg5[%c0_13, %c0_14] : memref<1x64xf32, #tpu.memory_space<vmem>>, vector<1x64xf32>
    %29 = vector.broadcast %28 : vector<1x64xf32> to vector<16x64xf32>
    %30 = arith.addf %27, %29 : vector<16x64xf32>
    %31 = vector.extract_strided_slice %30 {offsets = [0, 0], sizes = [16, 32], strides = [1, 1]} : vector<16x64xf32> to vector<16x32xf32>
    %32 = vector.extract_strided_slice %30 {offsets = [0, 32], sizes = [16, 32], strides = [1, 1]} : vector<16x64xf32> to vector<16x32xf32>
    %33 = arith.mulf %31, %31 : vector<16x32xf32>
    %34 = arith.truncf %33 : vector<16x32xf32> to vector<16x32xbf16>
    %c0_15 = arith.constant 0 : index
    %c0_16 = arith.constant 0 : index
    %35 = vector.load %arg6[%c0_15, %c0_16] : memref<32x32xbf16, #tpu.memory_space<vmem>>, vector<32x32xbf16>
    %cst_17 = arith.constant dense<0.000000e+00> : vector<16x32xf32>
    %36 = tpu.matmul %34, %35, %cst_17 {dimension_numbers = #tpu.dot_dimension_numbers<[1], [0], [0], [1], [0, 0, 1, 1], [], []>} : vector<16x32xbf16>, vector<32x32xbf16>, vector<16x32xf32> -> vector<16x32xf32>
    %cst_18 = arith.constant 9.99999974E-6 : f32
    %37 = vector.broadcast %cst_18 : f32 to vector<16x32xf32>
    %38 = arith.addf %36, %37 : vector<16x32xf32>
    %39 = math.rsqrt %38 : vector<16x32xf32>
    %40 = arith.mulf %31, %39 : vector<16x32xf32>
    %41 = arith.truncf %40 : vector<16x32xf32> to vector<16x32xbf16>
    %c0_19 = arith.constant 0 : index
    %c0_20 = arith.constant 0 : index
    %42 = vector.load %arg7[%c0_19, %c0_20] : memref<32x768xbf16, #tpu.memory_space<vmem>>, vector<32x768xbf16>
    %cst_21 = arith.constant dense<0.000000e+00> : vector<16x768xf32>
    %43 = tpu.matmul %41, %42, %cst_21 {dimension_numbers = #tpu.dot_dimension_numbers<[1], [0], [0], [1], [0, 0, 1, 1], [], []>} : vector<16x32xbf16>, vector<32x768xbf16>, vector<16x768xf32> -> vector<16x768xf32>
    %c0_22 = arith.constant 0 : index
    %c0_23 = arith.constant 0 : index
    %44 = vector.load %arg8[%c0_22, %c0_23] : memref<1x768xf32, #tpu.memory_space<vmem>>, vector<1x768xf32>
    %45 = vector.broadcast %44 : vector<1x768xf32> to vector<16x768xf32>
    %46 = arith.addf %43, %45 : vector<16x768xf32>
    %47 = vector.extract_strided_slice %46 {offsets = [0, 0], sizes = [16, 256], strides = [1, 1]} : vector<16x768xf32> to vector<16x256xf32>
    %48 = vector.extract_strided_slice %46 {offsets = [0, 256], sizes = [16, 256], strides = [1, 1]} : vector<16x768xf32> to vector<16x256xf32>
    %49 = arith.mulf %47, %48 : vector<16x256xf32>
    %50 = vector.extract_strided_slice %49 {offsets = [0, 0], sizes = [16, 128], strides = [1, 1]} : vector<16x256xf32> to vector<16x128xf32>
    %51 = vector.extract_strided_slice %49 {offsets = [0, 128], sizes = [16, 128], strides = [1, 1]} : vector<16x256xf32> to vector<16x128xf32>
    %52 = arith.addf %50, %51 : vector<16x128xf32>
    %cst_24 = arith.constant dense<0xFF800000> : vector<16xf32>
    %53 = vector.multi_reduction <maximumf>, %52, %cst_24 [1] : vector<16x128xf32> to vector<16xf32>
    %54 = vector.shape_cast %53 : vector<16xf32> to vector<16x1xf32>
    %55 = vector.broadcast %54 : vector<16x1xf32> to vector<16x128xf32>
    %56 = arith.subf %52, %55 : vector<16x128xf32>
    %57 = math.exp %56 : vector<16x128xf32>
    %58 = arith.truncf %57 : vector<16x128xf32> to vector<16x128xbf16>
    %c0_25 = arith.constant 0 : index
    %c0_26 = arith.constant 0 : index
    %59 = vector.load %arg9[%c0_25, %c0_26] : memref<128x128xbf16, #tpu.memory_space<vmem>>, vector<128x128xbf16>
    %cst_27 = arith.constant dense<0.000000e+00> : vector<16x128xf32>
    %60 = tpu.matmul %58, %59, %cst_27 {dimension_numbers = #tpu.dot_dimension_numbers<[1], [0], [0], [1], [0, 0, 1, 1], [], []>} : vector<16x128xbf16>, vector<128x128xbf16>, vector<16x128xf32> -> vector<16x128xf32>
    %cst_28 = arith.constant 1.000000e-30 : f32
    %61 = vector.broadcast %cst_28 : f32 to vector<16x128xf32>
    %62 = arith.maximumf %60, %61 : vector<16x128xf32>
    %63 = tpu.reciprocal %62 {approx = true} : vector<16x128xf32> -> vector<16x128xf32>
    %64 = arith.mulf %57, %63 : vector<16x128xf32>
    %65 = vector.extract_strided_slice %46 {offsets = [0, 512], sizes = [16, 256], strides = [1, 1]} : vector<16x768xf32> to vector<16x256xf32>
    %66 = vector.extract_strided_slice %65 {offsets = [0, 0], sizes = [16, 128], strides = [1, 1]} : vector<16x256xf32> to vector<16x128xf32>
    %67 = arith.mulf %64, %66 : vector<16x128xf32>
    %68 = arith.truncf %67 : vector<16x128xf32> to vector<16x128xbf16>
    %c0_29 = arith.constant 0 : index
    %c0_30 = arith.constant 0 : index
    %69 = vector.load %arg10[%c0_29, %c0_30] : memref<128x32xbf16, #tpu.memory_space<vmem>>, vector<128x32xbf16>
    %cst_31 = arith.constant dense<0.000000e+00> : vector<16x32xf32>
    %70 = tpu.matmul %68, %69, %cst_31 {dimension_numbers = #tpu.dot_dimension_numbers<[1], [0], [0], [1], [0, 0, 1, 1], [], []>} : vector<16x128xbf16>, vector<128x32xbf16>, vector<16x32xf32> -> vector<16x32xf32>
    %71 = vector.extract_strided_slice %65 {offsets = [0, 128], sizes = [16, 128], strides = [1, 1]} : vector<16x256xf32> to vector<16x128xf32>
    %72 = arith.mulf %64, %71 : vector<16x128xf32>
    %73 = arith.truncf %72 : vector<16x128xf32> to vector<16x128xbf16>
    %c0_32 = arith.constant 0 : index
    %c0_33 = arith.constant 0 : index
    %74 = vector.load %arg11[%c0_32, %c0_33] : memref<128x32xbf16, #tpu.memory_space<vmem>>, vector<128x32xbf16>
    %cst_34 = arith.constant dense<0.000000e+00> : vector<16x32xf32>
    %75 = tpu.matmul %73, %74, %cst_34 {dimension_numbers = #tpu.dot_dimension_numbers<[1], [0], [0], [1], [0, 0, 1, 1], [], []>} : vector<16x128xbf16>, vector<128x32xbf16>, vector<16x32xf32> -> vector<16x32xf32>
    %76 = arith.addf %70, %75 : vector<16x32xf32>
    %77 = arith.addf %32, %76 : vector<16x32xf32>
    %c0_35 = arith.constant 0 : index
    %c0_36 = arith.constant 0 : index
    %78 = vector.load %arg12[%c0_35, %c0_36] : memref<1x32xf32, #tpu.memory_space<vmem>>, vector<1x32xf32>
    %79 = vector.broadcast %78 : vector<1x32xf32> to vector<16x32xf32>
    %80 = arith.addf %77, %79 : vector<16x32xf32>
    %81 = arith.mulf %80, %80 : vector<16x32xf32>
    %82 = arith.mulf %80, %81 : vector<16x32xf32>
    %cst_37 = arith.constant 4.471500e-02 : f32
    %83 = vector.broadcast %cst_37 : f32 to vector<16x32xf32>
    %84 = arith.mulf %83, %82 : vector<16x32xf32>
    %85 = arith.addf %80, %84 : vector<16x32xf32>
    %cst_38 = arith.constant 0.797884583 : f32
    %86 = vector.broadcast %cst_38 : f32 to vector<16x32xf32>
    %87 = arith.mulf %86, %85 : vector<16x32xf32>
    %88 = math.tanh %87 : vector<16x32xf32>
    %cst_39 = arith.constant 1.000000e+00 : f32
    %89 = vector.broadcast %cst_39 : f32 to vector<16x32xf32>
    %90 = arith.addf %89, %88 : vector<16x32xf32>
    %cst_40 = arith.constant 5.000000e-01 : f32
    %91 = vector.broadcast %cst_40 : f32 to vector<16x32xf32>
    %92 = arith.mulf %91, %90 : vector<16x32xf32>
    %93 = arith.mulf %80, %92 : vector<16x32xf32>
    %94 = arith.truncf %93 : vector<16x32xf32> to vector<16x32xbf16>
    %c0_41 = arith.constant 0 : index
    %c0_42 = arith.constant 0 : index
    %95 = vector.load %arg13[%c0_41, %c0_42] : memref<32x16xbf16, #tpu.memory_space<vmem>>, vector<32x16xbf16>
    %cst_43 = arith.constant dense<0.000000e+00> : vector<16x16xf32>
    %96 = tpu.matmul %94, %95, %cst_43 {dimension_numbers = #tpu.dot_dimension_numbers<[1], [0], [0], [1], [0, 0, 1, 1], [], []>} : vector<16x32xbf16>, vector<32x16xbf16>, vector<16x16xf32> -> vector<16x16xf32>
    %c0_44 = arith.constant 0 : index
    %c0_45 = arith.constant 0 : index
    %97 = vector.load %arg14[%c0_44, %c0_45] : memref<1x16xf32, #tpu.memory_space<vmem>>, vector<1x16xf32>
    %98 = vector.broadcast %97 : vector<1x16xf32> to vector<16x16xf32>
    %99 = arith.addf %96, %98 : vector<16x16xf32>
    %100 = arith.addf %6, %99 : vector<16x16xf32>
    %c0_46 = arith.constant 0 : index
    %c0_47 = arith.constant 0 : index
    %101 = vector.load %arg15[%c0_46, %c0_47] : memref<16x16xf32, #tpu.memory_space<vmem>>, vector<16x16xf32>
    tpu.vector_store %arg15[%c0_46, %c0_47], %100 {strides = array<i32>} : memref<16x16xf32, #tpu.memory_space<vmem>>, vector<16x16xf32>,
    return
  }
  func.func @transform_0(%arg0: i32) -> (i32, i32) {
    %c0_i32 = arith.constant 0 : i32
    %c0_i32_0 = arith.constant 0 : i32
    return %arg0, %c0_i32 : i32, i32
  }
  func.func @transform_1(%arg0: i32) -> (i32, i32) {
    %c0_i32 = arith.constant 0 : i32
    %c0_i32_0 = arith.constant 0 : i32
    %c0_i32_1 = arith.constant 0 : i32
    return %c0_i32, %c0_i32_0 : i32, i32
  }
  func.func @transform_2(%arg0: i32) -> (i32, i32) {
    %c0_i32 = arith.constant 0 : i32
    %c0_i32_0 = arith.constant 0 : i32
    %c0_i32_1 = arith.constant 0 : i32
    return %c0_i32, %c0_i32_0 : i32, i32
  }
  func.func @transform_3(%arg0: i32) -> (i32, i32) {
    %c0_i32 = arith.constant 0 : i32
    %c0_i32_0 = arith.constant 0 : i32
    %c0_i32_1 = arith.constant 0 : i32
    return %c0_i32, %c0_i32_0 : i32, i32
  }
  func.func @transform_4(%arg0: i32) -> (i32, i32) {
    %c0_i32 = arith.constant 0 : i32
    %c0_i32_0 = arith.constant 0 : i32
    %c0_i32_1 = arith.constant 0 : i32
    return %c0_i32, %c0_i32_0 : i32, i32
  }
  func.func @transform_5(%arg0: i32) -> (i32, i32) {
    %c0_i32 = arith.constant 0 : i32
    %c0_i32_0 = arith.constant 0 : i32
    %c0_i32_1 = arith.constant 0 : i32
    return %c0_i32, %c0_i32_0 : i32, i32
  }
  func.func @transform_6(%arg0: i32) -> (i32, i32) {
    %c0_i32 = arith.constant 0 : i32
    %c0_i32_0 = arith.constant 0 : i32
    %c0_i32_1 = arith.constant 0 : i32
    return %c0_i32, %c0_i32_0 : i32, i32
  }
  func.func @transform_7(%arg0: i32) -> (i32, i32) {
    %c0_i32 = arith.constant 0 : i32
    %c0_i32_0 = arith.constant 0 : i32
    %c0_i32_1 = arith.constant 0 : i32
    return %c0_i32, %c0_i32_0 : i32, i32
  }
  func.func @transform_8(%arg0: i32) -> (i32, i32) {
    %c0_i32 = arith.constant 0 : i32
    %c0_i32_0 = arith.constant 0 : i32
    %c0_i32_1 = arith.constant 0 : i32
    return %c0_i32, %c0_i32_0 : i32, i32
  }
  func.func @transform_9(%arg0: i32) -> (i32, i32) {
    %c0_i32 = arith.constant 0 : i32
    %c0_i32_0 = arith.constant 0 : i32
    %c0_i32_1 = arith.constant 0 : i32
    return %c0_i32, %c0_i32_0 : i32, i32
  }
  func.func @transform_10(%arg0: i32) -> (i32, i32) {
    %c0_i32 = arith.constant 0 : i32
    %c0_i32_0 = arith.constant 0 : i32
    %c0_i32_1 = arith.constant 0 : i32
    return %c0_i32, %c0_i32_0 : i32, i32
  }
  func.func @transform_11(%arg0: i32) -> (i32, i32) {
    %c0_i32 = arith.constant 0 : i32
    %c0_i32_0 = arith.constant 0 : i32
    %c0_i32_1 = arith.constant 0 : i32
    return %c0_i32, %c0_i32_0 : i32, i32
  }
  func.func @transform_12(%arg0: i32) -> (i32, i32) {
    %c0_i32 = arith.constant 0 : i32
    %c0_i32_0 = arith.constant 0 : i32
    %c0_i32_1 = arith.constant 0 : i32
    return %c0_i32, %c0_i32_0 : i32, i32
  }
  func.func @transform_13(%arg0: i32) -> (i32, i32) {
    %c0_i32 = arith.constant 0 : i32
    %c0_i32_0 = arith.constant 0 : i32
    %c0_i32_1 = arith.constant 0 : i32
    return %c0_i32, %c0_i32_0 : i32, i32
  }
  func.func @transform_14(%arg0: i32) -> (i32, i32) {
    %c0_i32 = arith.constant 0 : i32
    %c0_i32_0 = arith.constant 0 : i32
    return %arg0, %c0_i32 : i32, i32
  }
}

</mosaic_0001>

<bundles_post_ra>
// kernel: backbone_forward.1
= control target key start
LH: loop header
LB: loop body
LE: loop exit
PB: predicated region body
PF: predicated region fallthrough
CT: control target
= control target key end

     0   :  { %v1259_v0 = vmov 0.0   ;;  %vm1260_vm0 = vmmov 0   ;;  %vm78_vm1 = vcmask 261120   ;;  %s1261_s23 = smov 32   ;;  %v1263_v52 = vmov 0   ;;  %s1612_s1 = inlined_call_operand.vmem [shape: bf16[32,80], index: 1, kind: input, shape index: {}]   ;;  %s1613_s0 = inlined_call_operand.vmem [shape: bf16[16,32], index: 0, kind: input, shape index: {}]   ;;  %s1614_s2 = inlined_call_operand.vmem [shape: f32[1,80], index: 2, kind: input, shape index: {}]   ;;  %s1615_s3 = inlined_call_operand.vmem [shape: bf16[32,64], index: 3, kind: input, shape index: {}]   ;;  %s1616_s5 = inlined_call_operand.vmem [shape: bf16[32,32], index: 5, kind: input, shape index: {}]   ;;  %s1617_s4 = inlined_call_operand.vmem [shape: f32[1,64], index: 4, kind: input, shape index: {}]   ;;  %s1618_s6 = inlined_call_operand.vmem [shape: bf16[32,768], index: 6, kind: input, shape index: {}]   ;;  %s1619_s8 = inlined_call_operand.vmem [shape: bf16[128,128], index: 8, kind: input, shape index: {}]   ;;  %s1620_s7 = inlined_call_operand.vmem [shape: f32[1,768], index: 7, kind: input, shape index: {}]   ;;  %s1621_s10 = inlined_call_operand.vmem [shape: bf16[128,32], index: 10, kind: input, shape index: {}]   ;;  %s1622_s9 = inlined_call_operand.vmem [shape: bf16[128,32], index: 9, kind: input, shape index: {}]   ;;  %s1623_s11 = inlined_call_operand.vmem [shape: f32[1,32], index: 11, kind: input, shape index: {}]   ;;  %s1624_s12 = inlined_call_operand.vmem [shape: bf16[32,16], index: 12, kind: input, shape index: {}]   ;;  %s1625_s13 = inlined_call_operand.vmem [shape: f32[1,16], index: 13, kind: input, shape index: {}]   ;;  %s1626_s14 = inlined_call_operand.vmem [shape: f32[16,16], index: 14, kind: output, shape index: {}]  }
   0x1   :  { %1086 = vmatprep.subr.bf16.mxu0 %v1259_v0  ;;  %v1188_v1 = vld [vmem:[%s1612_s1] sm:$0xff]   ;;  %1090 = vmatprep.mubr.msk.bf16.mxu0 %vm1260_vm0, %v1259_v0  ;;  %v1189_v2 = vld [vmem:[%s1612_s1 + $0x8] sm:$0xff]   ;;  %v1201_v56 = vld [vmem:[%s1618_s6 + $0x38] ss:$24 sps:$4 sm:$0xff]   ;;  %vm984_vm2 = vcmask 130048  }
   0x2   :  { %1087 = vmatpush3.bf16.msra.mxu0 %v1188_v1  ;;  %v1190_v3 = vld [vmem:[%s1613_s0] sm:$0xff]   ;;  %v1192_v9 = vld [vmem:[%s1615_s3 + $0x8] sm:$0xff]   ;;  %431 = vmatprep.mubr.bf16.mxu1 %v1263_v52  ;;  %v1203_v57 = vld [vmem:[%s1618_s6 + $0x3c] ss:$24 sps:$4 sm:$0xff]  }
   0x3   :  { %1088 = vmatprep.subr.bf16.mxu0 %v1259_v0  ;;  %v991_v4 = vld [vmem:[%s1614_s2] ss:$0 sm:$0xff]  ;;  %s1262_s2 = smov 80   ;;  %v1194_v40 = vld [vmem:[%s1616_s5 + $0x8] sm:$0xff]   ;;  %v1198_v54 = vld [vmem:[%s1618_s6 + $0x4] ss:$24 sps:$4 sm:$0xff]  }
   0x4   :  { %v1191_v5 = vld [vmem:[%s1615_s3] sm:$0xff]   ;;  %399 = vmatprep.subr.bf16.mxu1 %v1198_v54  ;;  %v1204_v58 = vld [vmem:[%s1618_s6 + $0x34] ss:$24 sps:$4 sm:$0xff]   ;;  %v1206_v59 = vld [vmem:[%s1618_s6 + $0x30] ss:$24 sps:$4 sm:$0xff]  }
   0x5   :  { %v1193_v39 = vld [vmem:[%s1616_s5] sm:$0xff]   ;;  %v1209_v60 = vld [vmem:[%s1618_s6 + $0x14] ss:$24 sps:$4 sm:$0xff]  }
   0x6   :  { %1089 = vmatpush3.bf16.msra.mxu0 %v1189_v2  ;;  %v996_v41 = vld [vmem:[%s1617_s4] ss:$0 sm:$0xff]  ;;  %v1197_v53 = vld [vmem:[%s1618_s6 + $0xc] ss:$24 sps:$4 sm:$0xff]  }
   0x7   :  { %1094 = vmatprep.subr.bf16.mxu0 %v1259_v0  ;;  %v1195_v51 = vld [vmem:[%s1618_s6 + $0x8] ss:$24 sps:$4 sm:$0xff]  }
   0x8   :  { %v1200_v55 = vld [vmem:[%s1618_s6] ss:$24 sps:$4 sm:$0xff]  }
   0x9   :  { %1091 = vmatmul.mubr.msk.bf16.vlgmr.msra.gmra.mrb[0].mxu0 %vm78_vm1, %v1190_v3  ;;  %400 = vmatpush1.bf16.msra.mxu1 %v1200_v55 }
   0xa   :  { %1098 = vmatprep.mubr.msk.bf16.mxu0 %vm1260_vm0, %v1259_v0  ;;  %1095 = vmatpush3.bf16.msra.mxu0 %v1191_v5 }
   0xb   :  { %1096 = vmatprep.subr.bf16.mxu0 %v1259_v0  ;;  %401 = vmatprep.subr.bf16.mxu1 %v1204_v58  ;;  %v1218_v58 = vld [vmem:[%s1619_s8 + $0x28] sm:$0xff]  }
   0xd   :  { %402 = vmatpush1.bf16.msra.mxu1 %v1206_v59  ;;  %v1219_v59 = vld [vmem:[%s1619_s8 + $0x30] sm:$0xff]  }
   0xe   :  { %1097 = vmatpush3.bf16.msra.mxu0 %v1192_v9  ;;  %485 = vmatprep.subr.bf16.mxu1 %v1209_v60  ;;  %v1207_v9 = vld [vmem:[%s1618_s6 + $0x10] ss:$24 sps:$4 sm:$0xff]   ;;  %v1220_v60 = vld [vmem:[%s1619_s8 + $0x38] sm:$0xff]  }
   0xf   :  { %1102 = vmatprep.subr.bf16.mxu0 %v1259_v0 }
  0xdc   :  { %v116_v6 = vpop.f32.mrb[0].mxu0 }
  0xdd   :  { %v1363_v7 = vadd.f32 %v991_v4, %v116_v6  ;;  %v1092_v8 = vpop.f32.mrb[1].mxu0 }
  0xde   :  { %v119_v10 = vpop.f32.mrb[2].mxu0 }
  0xdf   :  { %145 = vrot.lane.b32.xlu0 %v1363_v7, %s1261_s23  ;;  %v1093_v11 = vpop.f32.mrb[3].mxu0  ;;  %v1371_v12 = vadd.f32 %v991_v4, %v119_v10  ;;  %v123_v13 = vmul.f32 %v1363_v7, %v1363_v7 }
  0xe0   :  { %v1212_v11 = vld [vmem:[%s1618_s6 + $0x44] ss:$24 sps:$4 sm:$0xff]  }
  0xe1   :  { %v124_v14 = vmul.f32 %v1371_v12, %v1371_v12  ;;  %v125_v15 = vmul.f32 %v123_v13, %v1363_v7  ;;  %v1210_v13 = vld [vmem:[%s1618_s6 + $0x40] ss:$24 sps:$4 sm:$0xff]  }
  0xe3   :  { %147 = vrot.lane.b32.xlu0 %v1371_v12, %s1261_s23  ;;  %v126_v16 = vmul.f32 %v124_v14, %v1371_v12  ;;  %v127_v17 = vmul.f32 0.044715, %v125_v15  ;;  %v1213_v14 = vld [vmem:[%s1619_s8] sm:$0xff]   ;;  %v1214_v15 = vld [vmem:[%s1619_s8 + $0x8] sm:$0xff]  }
  0xe5   :  { %v128_v18 = vmul.f32 0.044715, %v126_v16  ;;  %v129_v19 = vadd.f32 %v127_v17, %v1363_v7  ;;  %v1215_v16 = vld [vmem:[%s1619_s8 + $0x10] sm:$0xff]   ;;  %v306_v17 = vlaneseq }
  0xe7   :  { %v130_v20 = vadd.f32 %v128_v18, %v1371_v12  ;;  %v131_v21 = vmul.f32 0.7978846, %v129_v19  ;;  %v1467_v18 = vshrl.u32 %v306_v17, 7 }
  0xe9   :  { %v132_v22 = vmul.f32 0.7978846, %v130_v20  ;;  %1239 = vtanh.f32 %v131_v21  ;;  %v308_v19 = vsub.s32 0, %v1467_v18  ;;  %v316_v20 = vsub.s32 2, %v1467_v18  ;;  %v1474_v21 = vld [vmem:[%s1620_s7] sm:$0x3f] }
  0xeb   :  { %1241 = vtanh.f32 %v132_v22  ;;  %v312_v22 = vsub.s32 1, %v1467_v18 }
  0xf3   :  { %v1240_v23 = vpop.eup %1239 }
  0xf4   :  { %v135_v25 = vadd.f32 1.0, %v1240_v23  ;;  %v320_v23 = vsub.s32 3, %v1467_v18 }
  0xf5   :  { %v1242_v24 = vpop.eup %1241 }
  0xf6   :  { %v136_v26 = vadd.f32 1.0, %v1242_v24  ;;  %v137_v27 = vmul.f32 0.5, %v135_v25  ;;  %v309_v24 = vrot.slane %v1474_v21, %v308_v19  ;;  %v317_v25 = vrot.slane %v1474_v21, %v316_v20 }
  0xf8   :  { %v138_v28 = vmul.f32 0.5, %v136_v26  ;;  %v139_v29 = vmul.f32 %v137_v27, %v1363_v7  ;;  %v313_v26 = vrot.slane %v1474_v21, %v312_v22  ;;  %v321_v27 = vrot.slane %v1474_v21, %v320_v23 }
  0xfa   :  { %v140_v30 = vmul.f32 %v138_v28, %v1371_v12  ;;  %v141_v32 = vmul.f32 0.999995, %v139_v29 }
  0xfc   :  { %v142_v33 = vmul.f32 0.999995, %v140_v30 }
 0x151   :  { %v146_v31 = vpop.permute.xlu0 %145 }
 0x152   :  { %v151_v35 = vadd.f32 %v146_v31, %v141_v32 }
 0x155   :  { %v148_v34 = vpop.permute.xlu0 %147 }
 0x156   :  { %v152_v36 = vadd.f32 %v148_v34, %v142_v33 }
 0x158   :  { %v153_v37 = vpack.c.bf16 %v152_v36, %v151_v35 }
 0x15a   :  { %166 = vrot.lane.b32.xlu1 %v153_v37, %s1262_s2 }
 0x1cc   :  { %v167_v38 = vpop.permute.xlu1 %166 }
 0x1cd   :  { %1099 = vmatmul.mubr.msk.bf16.vlgmr.msra.gmra.mrb[4].mxu0 %vm78_vm1, %v167_v38 }
 0x1ce   :  { %1106 = vmatprep.mubr.msk.bf16.mxu0 %vm1260_vm0, %v1259_v0  ;;  %1103 = vmatpush3.bf16.msra.mxu0 %v1193_v39 }
 0x1cf   :  { %1104 = vmatprep.subr.bf16.mxu0 %v1259_v0 }
 0x1d2   :  { %1105 = vmatpush3.bf16.msra.mxu0 %v1194_v40 }
 0x1d3   :  { %442 = vmatprep.subr.bf16.mxu0 %v1197_v53 }
 0x2a0   :  { %v217_v42 = vpop.f32.mrb[4].mxu0 }
 0x2a1   :  { %v1399_v43 = vadd.f32 %v996_v41, %v217_v42  ;;  %v1100_v44 = vpop.f32.mrb[5].mxu0 }
 0x2a2   :  { %v220_v45 = vpop.f32.mrb[6].mxu0 }
 0x2a3   :  { %v1401_v46 = vadd.f32 %v996_v41, %v220_v45  ;;  %v1101_v47 = vpop.f32.mrb[7].mxu0  ;;  %v224_v48 = vmul.f32 %v1399_v43, %v1399_v43 }
 0x2a5   :  { %v225_v49 = vmul.f32 %v1401_v46, %v1401_v46 }
 0x2a7   :  { %v226_v50 = vpack.c.bf16 %v225_v49, %v224_v48 }
 0x2a9   :  { %1107 = vmatmul.mubr.msk.bf16.vlgmr.msra.gmra.mrb[8].mxu0 %vm78_vm1, %v226_v50 }
 0x2aa   :  { %474 = vmatprep.mubr.bf16.mxu0 %v1263_v52  ;;  %443 = vmatpush1.bf16.msra.mxu0 %v1195_v51 }
 0x2ab   :  { %444 = vmatprep.subr.bf16.mxu0 %v1203_v57  ;;  %v1217_v57 = vld [vmem:[%s1619_s8 + $0x20] sm:$0xff]  }
 0x2ae   :  { %445 = vmatpush1.bf16.msra.mxu0 %v1201_v56  ;;  %v1216_v56 = vld [vmem:[%s1619_s8 + $0x18] sm:$0xff]  }
 0x2af   :  { %1110 = vmatprep.subr.bf16.mxu0 %v1259_v0 }
 0x37c   :  { %v280_v61 = vpop.f32.mrb[8].mxu0 }
 0x37d   :  { %v281_v62 = vadd.f32 1e-05, %v280_v61  ;;  %v1108_v63 = vpop.f32.mrb[9].mxu0  ;;  %v1221_v61 = vld [vmem:[%s1621_s10] sm:$0xff]  }
 0x37e   :  { %v283_v1 = vpop.f32.mrb[10].mxu0  ;;  %v1223_v63 = vld [vmem:[%s1621_s10 + $0x10] sm:$0xff]  }
 0x37f   :  { %1243 = vrsqrt.f32 %v281_v62  ;;  %v284_v2 = vadd.f32 1e-05, %v283_v1  ;;  %v1109_v3 = vpop.f32.mrb[11].mxu0  ;;  %v1222_v62 = vld [vmem:[%s1621_s10 + $0x8] sm:$0xff]  }
 0x381   :  { %1245 = vrsqrt.f32 %v284_v2 }
 0x389   :  { %v1244_v4 = vpop.eup %1243 }
 0x38a   :  { %v289_v6 = vmul.f32 %v1244_v4, %v1399_v43 }
 0x38b   :  { %v1246_v5 = vpop.eup %1245 }
 0x38c   :  { %v290_v8 = vmul.f32 %v1246_v5, %v1401_v46 }
 0x38e   :  { %v291_v10 = vpack.c.bf16 %v290_v8, %v289_v6 }
 0x390   :  { %1015 = vmatmul.mubr.msk.bf16.vlgmr.msra.gmra.mrb[0].mxu1 %vm78_vm1, %v291_v10  ;;  %1016 = vmatmul.mubr.msk.bf16.vlgmr.msra.gmra.mrb[12].mxu0 %vm78_vm1, %v291_v10 }
 0x391   :  { %486 = vmatpush1.bf16.msra.mxu1 %v1207_v9  ;;  %517 = vmatprep.mubr.bf16.mxu1 %v1263_v52 }
 0x392   :  { %487 = vmatprep.subr.bf16.mxu1 %v1212_v11  ;;  %1126 = vmatprep.mubr.msk.bf16.mxu0 %vm1260_vm0, %v1259_v0  ;;  %v1224_v11 = vld [vmem:[%s1621_s10 + $0x18] sm:$0xff]  }
 0x393   :  { %1111 = vmatpush3.bf16.msra.mxu0 %v1213_v14  ;;  %v1226_v14 = vld [vmem:[%s1621_s10 + $0x28] sm:$0xff]  }
 0x394   :  { %1112 = vmatprep.subr.bf16.mxu0 %v1259_v0 }
 0x395   :  { %488 = vmatpush1.bf16.msra.mxu1 %v1210_v13  ;;  %v1225_v13 = vld [vmem:[%s1621_s10 + $0x20] sm:$0xff]  }
 0x396   :  { %1130 = vmatprep.subr.bf16.mxu1 %v1259_v0 }
 0x397   :  { %1113 = vmatpush3.bf16.msra.mxu0 %v1214_v15  ;;  %v1227_v15 = vld [vmem:[%s1621_s10 + $0x30] sm:$0xff]  }
 0x398   :  { %1017 = vmatmul.mubr.msk.bf16.vlgmr.msra.gmra.mrb[4].mxu1 %vm78_vm1, %v291_v10  ;;  %1114 = vmatprep.subr.bf16.mxu0 %v1259_v0 }
 0x399   :  { %1146 = vmatprep.mubr.msk.bf16.mxu1 %vm1260_vm0, %v1259_v0  ;;  %1131 = vmatpush3.bf16.msra.mxu1 %v1221_v61 }
 0x39a   :  { %1132 = vmatprep.subr.bf16.mxu1 %v1259_v0 }
 0x39b   :  { %1115 = vmatpush3.bf16.msra.mxu0 %v1215_v16  ;;  %v1228_v16 = vld [vmem:[%s1621_s10 + $0x38] sm:$0xff]  }
 0x39c   :  { %1116 = vmatprep.subr.bf16.mxu0 %v1259_v0 }
 0x39d   :  { %1133 = vmatpush3.bf16.msra.mxu1 %v1222_v62 }
 0x39e   :  { %1134 = vmatprep.subr.bf16.mxu1 %v1259_v0 }
 0x39f   :  { %1117 = vmatpush3.bf16.msra.mxu0 %v1216_v56  ;;  %v1237_v56 = vld [vmem:[%s1624_s12] sm:$0xff]  }
 0x3a0   :  { %1118 = vmatprep.subr.bf16.mxu0 %v1259_v0 }
 0x3a1   :  { %1135 = vmatpush3.bf16.msra.mxu1 %v1223_v63 }
 0x3a2   :  { %1136 = vmatprep.subr.bf16.mxu1 %v1259_v0 }
 0x3a3   :  { %1119 = vmatpush3.bf16.msra.mxu0 %v1217_v57  ;;  %v1238_v57 = vld [vmem:[%s1624_s12 + $0x8] sm:$0xff]  }
 0x3a4   :  { %1120 = vmatprep.subr.bf16.mxu0 %v1259_v0 }
 0x3a5   :  { %1137 = vmatpush3.bf16.msra.mxu1 %v1224_v11 }
 0x3a6   :  { %1138 = vmatprep.subr.bf16.mxu1 %v1259_v0 }
 0x3a7   :  { %1121 = vmatpush3.bf16.msra.mxu0 %v1218_v58 }
 0x3a8   :  { %1122 = vmatprep.subr.bf16.mxu0 %v1259_v0 }
 0x3a9   :  { %1139 = vmatpush3.bf16.msra.mxu1 %v1225_v13 }
 0x3aa   :  { %1140 = vmatprep.subr.bf16.mxu1 %v1259_v0 }
 0x3ab   :  { %1123 = vmatpush3.bf16.msra.mxu0 %v1219_v59 }
 0x3ac   :  { %1124 = vmatprep.subr.bf16.mxu0 %v1259_v0 }
 0x3ad   :  { %1141 = vmatpush3.bf16.msra.mxu1 %v1226_v14 }
 0x3ae   :  { %1142 = vmatprep.subr.bf16.mxu1 %v1259_v0 }
 0x3af   :  { %1125 = vmatpush3.bf16.msra.mxu0 %v1220_v60 }
 0x3b0   :  { %1170 = vmatprep.subr.bf16.mxu0 %v1259_v0 }
 0x3b1   :  { %1143 = vmatpush3.bf16.msra.mxu1 %v1227_v15 }
 0x3b2   :  { %1144 = vmatprep.subr.bf16.mxu1 %v1259_v0 }
 0x3b5   :  { %1145 = vmatpush3.bf16.msra.mxu1 %v1228_v16 }
 0x3b6   :  { %1150 = vmatprep.subr.bf16.mxu1 %v1259_v0 }
 0x463   :  { %v433_v28 = vpop.f32.mrb[0].mxu1  ;;  %v476_v29 = vpop.f32.mrb[12].mxu0 }
 0x464   :  { %v434_v30 = vadd.f32 %v433_v28, %v309_v24  ;;  %v477_v31 = vadd.f32 %v476_v29, %v317_v25  ;;  %v435_v32 = vpop.f32.mrb[1].mxu1  ;;  %v478_v33 = vpop.f32.mrb[13].mxu0 }
 0x465   :  { %v436_v34 = vadd.f32 %v435_v32, %v313_v26  ;;  %v479_v35 = vadd.f32 %v478_v33, %v321_v27  ;;  %v437_v36 = vpop.f32.mrb[2].mxu1  ;;  %v480_v37 = vpop.f32.mrb[14].mxu0 }
 0x466   :  { %v528_v38 = vmul.f32 %v477_v31, %v434_v30  ;;  %v438_v39 = vadd.f32 %v437_v36, %v309_v24  ;;  %v481_v40 = vadd.f32 %v480_v37, %v317_v25  ;;  %v439_v41 = vpop.f32.mrb[3].mxu1  ;;  %v482_v42 = vpop.f32.mrb[15].mxu0  ;;  %v324_v25 = vsub.s32 4, %v1467_v18 }
 0x467   :  { %v529_v44 = vmul.f32 %v479_v35, %v436_v34  ;;  %v440_v45 = vadd.f32 %v439_v41, %v313_v26  ;;  %v483_v47 = vadd.f32 %v482_v42, %v321_v27  ;;  %v328_v26 = vsub.s32 5, %v1467_v18  ;;  %v1230_v42 = vld [vmem:[%s1622_s9 + $0x8] sm:$0xff]  }
 0x468   :  { %v530_v48 = vmul.f32 %v481_v40, %v438_v39  ;;  %v325_v27 = vrot.slane %v1474_v21, %v324_v25 }
 0x469   :  { %v531_v49 = vmul.f32 %v483_v47, %v440_v45  ;;  %v532_v50 = vadd.f32 %v529_v44, %v528_v38  ;;  %v329_v28 = vrot.slane %v1474_v21, %v328_v26  ;;  %v1229_v21 = vld [vmem:[%s1622_s9] sm:$0xff]   ;;  %v1231_v44 = vld [vmem:[%s1622_s9 + $0x10] sm:$0xff]   ;;  %v1232_v45 = vld [vmem:[%s1622_s9 + $0x18] sm:$0xff]  }
 0x46a   :  { %v1233_v47 = vld [vmem:[%s1622_s9 + $0x20] sm:$0xff]  }
 0x46b   :  { %v1482_v51 = vpop.f32.mrb[4].mxu1  ;;  %534 = vmax.xlane.f32.xlu1 %v532_v50  ;;  %v533_v52 = vadd.f32 %v531_v49, %v530_v48  ;;  %v1234_v48 = vld [vmem:[%s1622_s9 + $0x28] sm:$0xff]   ;;  %v1235_v49 = vld [vmem:[%s1622_s9 + $0x30] sm:$0xff]  }
 0x46c   :  { %v1484_v53 = vpop.f32.mrb[5].mxu1  ;;  %v520_v30 = vadd.f32 %v1482_v51, %v325_v27 }
 0x46d   :  { %v1486_v54 = vpop.f32.mrb[6].mxu1  ;;  %536 = vmax.xlane.f32.xlu0 %v533_v52  ;;  %v522_v31 = vadd.f32 %v1484_v53, %v329_v28 }
 0x46e   :  { %v1488_v55 = vpop.f32.mrb[7].mxu1  ;;  %v524_v34 = vadd.f32 %v1486_v54, %v325_v27 }
 0x46f   :  { %v526_v35 = vadd.f32 %v1488_v55, %v329_v28  ;;  %v1042_v55 = vld [vmem:[%s1623_s11] ss:$0 sm:$0xff]  ;;  %s1264_s11 = smov 96  }
 0x4f8   :  { %v535_v1 = vpop.xlane.xlu1 %534 }
 0x4f9   :  { %v538_v2 = vsub.f32 %v532_v50, %v535_v1  ;;  %v1236_v50 = vld [vmem:[%s1622_s9 + $0x38] sm:$0xff]  }
 0x4fa   :  { %v537_v3 = vpop.xlane.xlu0 %536 }
 0x4fb   :  { %v540_v4 = vmul.f32 1.442695, %v538_v2  ;;  %v539_v5 = vsub.f32 %v533_v52, %v537_v3 }
 0x4fd   :  { %v542_v6 = vmul.f32 1.442695, %v539_v5  ;;  %1247 = vpow2.f32 %v540_v4 }
 0x4ff   :  { %1249 = vpow2.f32 %v542_v6 }
 0x507   :  { %v1248_v8 = vpop.eup %1247 }
 0x509   :  { %v1250_v9 = vpop.eup %1249 }
 0x50a   :  { %v544_v10 = vpack.c.bf16 %v1250_v9, %v1248_v8 }
 0x50c   :  { %1127 = vmatmul.mubr.bf16.vlgmr.msra.gmra.mrb[16].mxu0 %v544_v10 }
 0x50d   :  { %1174 = vmatprep.mubr.msk.bf16.mxu0 %vm1260_vm0, %v1259_v0  ;;  %1171 = vmatpush3.bf16.msra.mxu0 %v1237_v56 }
 0x50e   :  { %1172 = vmatprep.subr.bf16.mxu0 %v1259_v0 }
 0x511   :  { %1173 = vmatpush3.bf16.msra.mxu0 %v1238_v57 }
 0x5df   :  { %v643_v17 = vpop.f32.mrb[16].mxu0 }
 0x5e0   :  { %v650_v19 = vmax.f32 %v643_v17, 1e-30  ;;  %v1128_v20 = vpop.f32.mrb[17].mxu0 }
 0x5e1   :  { %v646_v22 = vpop.f32.mrb[18].mxu0 }
 0x5e2   :  { %1251 = vrcp.f32 %v650_v19  ;;  %v651_v23 = vmax.f32 %v646_v22, 1e-30  ;;  %v1129_v24 = vpop.f32.mrb[19].mxu0 }
 0x5e4   :  { %1253 = vrcp.f32 %v651_v23  ;;  %v1043_v23 = vld [vmem:[%s1625_s13] ss:$0 sm:$0xff] }
 0x5ec   :  { %v1252_v29 = vpop.eup %1251 }
 0x5ed   :  { %v654_v32 = vmul.f32 %v1252_v29, %v1248_v8 }
 0x5ee   :  { %v1254_v33 = vpop.eup %1253 }
 0x5ef   :  { %v655_v36 = vmul.f32 %v1254_v33, %v1250_v9  ;;  %v675_v37 = vmul.f32 %v654_v32, %v522_v31  ;;  %v656_v38 = vmul.f32 %v654_v32, %v520_v30 }
 0x5f1   :  { %v676_v39 = vmul.f32 %v655_v36, %v526_v35  ;;  %v657_v18 = vmul.f32 %v655_v36, %v524_v34 }
 0x5f3   :  { %v677_v40 = vpack.c.bf16 %v676_v39, %v675_v37  ;;  %v658_v41 = vpack.c.bf16 %v657_v18, %v656_v38 }
 0x5f5   :  { %1147 = vmatmul.mubr.bf16.vlgmr.msra.gmra.mrb[8].mxu1 %v677_v40 }
 0x5f6   :  { %1151 = vmatpush3.bf16.msra.mxu1 %v1229_v21  ;;  %1166 = vmatprep.mubr.msk.bf16.mxu1 %vm1260_vm0, %v1259_v0 }
 0x5f7   :  { %1152 = vmatprep.subr.bf16.mxu1 %v1259_v0 }
 0x5fa   :  { %1153 = vmatpush3.bf16.msra.mxu1 %v1230_v42 }
 0x5fb   :  { %1154 = vmatprep.subr.bf16.mxu1 %v1259_v0 }
 0x5fe   :  { %1155 = vmatpush3.bf16.msra.mxu1 %v1231_v44 }
 0x5ff   :  { %1156 = vmatprep.subr.bf16.mxu1 %v1259_v0 }
 0x602   :  { %1157 = vmatpush3.bf16.msra.mxu1 %v1232_v45 }
 0x603   :  { %1158 = vmatprep.subr.bf16.mxu1 %v1259_v0 }
 0x606   :  { %1159 = vmatpush3.bf16.msra.mxu1 %v1233_v47 }
 0x607   :  { %1160 = vmatprep.subr.bf16.mxu1 %v1259_v0 }
 0x60a   :  { %1161 = vmatpush3.bf16.msra.mxu1 %v1234_v48 }
 0x60b   :  { %1162 = vmatprep.subr.bf16.mxu1 %v1259_v0 }
 0x60e   :  { %1163 = vmatpush3.bf16.msra.mxu1 %v1235_v49 }
 0x60f   :  { %1164 = vmatprep.subr.bf16.mxu1 %v1259_v0 }
 0x612   :  { %1165 = vmatpush3.bf16.msra.mxu1 %v1236_v50 }
 0x615   :  { %1167 = vmatmul.mubr.bf16.vlgmr.msra.gmra.mrb[8].mxu1 %v658_v41 }
 0x6e8   :  { %v865_v51 = vpop.f32.mrb[8].mxu1 }
 0x6e9   :  { %874 = vrot.lane.b32.xlu0 %v865_v51, %s1261_s23  ;;  %v1168_v52 = vpop.f32.mrb[9].mxu1 }
 0x6ea   :  { %v868_v53 = vpop.f32.mrb[10].mxu1 }
 0x6eb   :  { %876 = vrot.lane.b32.xlu1 %v868_v53, %s1261_s23  ;;  %v1169_v54 = vpop.f32.mrb[11].mxu1 }
 0x6ef   :  { %888 = vrot.lane.b32.xlu1 %v1042_v55, %s1261_s23 }
 0x75b   :  { %v875_v58 = vpop.permute.xlu0 %874 }
 0x75c   :  { %v880_v60 = vadd.f32 %v875_v58, %v1399_v43 }
 0x75d   :  { %v877_v59 = vpop.permute.xlu1 %876 }
 0x75e   :  { %v881_v61 = vadd.f32 %v877_v59, %v1401_v46 }
 0x761   :  { %v889_v62 = vpop.permute.xlu1 %888 }
 0x762   :  { %v891_v63 = vadd.f32 %v889_v62, %v880_v60  ;;  %v892_v1 = vadd.f32 %v889_v62, %v881_v61 }
 0x764   :  { %v893_v2 = vmul.f32 %v891_v63, %v891_v63  ;;  %v894_v3 = vmul.f32 %v892_v1, %v892_v1 }
 0x766   :  { %v895_v4 = vmul.f32 %v893_v2, %v891_v63  ;;  %v896_v5 = vmul.f32 %v894_v3, %v892_v1 }
 0x768   :  { %v897_v6 = vmul.f32 0.044715, %v895_v4  ;;  %v898_v8 = vmul.f32 0.044715, %v896_v5 }
 0x76a   :  { %v899_v9 = vadd.f32 %v897_v6, %v891_v63  ;;  %v900_v10 = vadd.f32 %v898_v8, %v892_v1 }
 0x76c   :  { %v901_v11 = vmul.f32 0.7978846, %v899_v9  ;;  %v902_v0 = vmul.f32 0.7978846, %v900_v10 }
 0x76e   :  { %1255 = vtanh.f32 %v901_v11 }
 0x76f   :  { %1257 = vtanh.f32 %v902_v0 }
 0x778   :  { %v1256_v13 = vpop.eup %1255 }
 0x779   :  { %v1258_v14 = vpop.eup %1257  ;;  %v905_v43 = vadd.f32 1.0, %v1256_v13 }
 0x77a   :  { %v906_v15 = vadd.f32 1.0, %v1258_v14 }
 0x77b   :  { %v907_v46 = vmul.f32 0.5, %v905_v43 }
 0x77c   :  { %v908_v16 = vmul.f32 0.5, %v906_v15 }
 0x77d   :  { %v909_v17 = vmul.f32 %v907_v46, %v891_v63 }
 0x77e   :  { %v910_v19 = vmul.f32 %v908_v16, %v892_v1 }
 0x780   :  { %v911_v20 = vpack.c.bf16 %v910_v19, %v909_v17 }
 0x782   :  { %924 = vrot.lane.b32.xlu0 %v911_v20, %s1264_s11 }
 0x7f4   :  { %v925_v22 = vpop.permute.xlu0 %924 }
 0x7f5   :  { %1175 = vmatmul.mubr.msk.bf16.vlgmr.msra.gmra.mrb[20].mxu0 %vm78_vm1, %v925_v22 }
 0x8c8   :  { %v975_v24 = vpop.f32.mrb[20].mxu0 }
 0x8c9   :  { %v976_v25 = vadd.f32 %v1043_v23, %v975_v24  ;;  %v1176_v26 = vpop.f32.mrb[21].mxu0 }
 0x8ca   :  { %v978_v27 = vpop.f32.mrb[22].mxu0 }
 0x8cb   :  { %v982_v28 = vadd.f32 %v976_v25, %v1363_v7  ;;  %v979_v29 = vadd.f32 %v1043_v23, %v978_v27  ;;  %v1177_v30 = vpop.f32.mrb[23].mxu0 }
 0x8cd   :  { %985 = vst.msk [vmem:[%s1626_s14] sm:$0xff] %vm984_vm2, %v982_v28  ;;  %v983_v31 = vadd.f32 %v979_v29, %v1371_v12 }
 0x8cf   :  { %986 = vst.msk [vmem:[%s1626_s14 + $0x8] sm:$0xff] %vm984_vm2, %v983_v31 }

</bundles_post_ra>
